<compile_context>
chip_gen: v7x
topology: tpu7x:2x2x1
jax: 0.10.0
libtpu: 0.0.40
codegen_flags: <defaults>
</compile_context>

<pallas_src>
import functools

import jax
import jax.numpy as jnp
from jax import lax
from jax.experimental import pallas as pl
from jax.experimental.pallas import tpu as pltpu


def _clip_pairwise_loss_all_kernel(gt_ref, repr_ref, out_ref, *, num_gt):
    # gt_ref:   SMEM (L,)  int32  -- ground-truth clip ordering (row indices)
    # repr_ref: VMEM (M, N) float -- clip feature vectors (native dtype)
    # out_ref:  SMEM (1, 1) f32   -- scalar total loss
    L = num_gt
    M, _ = repr_ref.shape
    L_pad = max(8, ((L + 7) // 8) * 8)      # sublane-packed f32 row block

    R = repr_ref[...]                        # (M, N), native dtype, no upcast

    # ---- Gather: build a (L_pad, M) one-hot matrix from the SMEM GT scalars
    # and do ONE MXU matmul.  Padding rows (a >= L) are all-zero.
    a_idx = lax.broadcasted_iota(jnp.int32, (L_pad, M), 0)   # position in GT
    c_idx = lax.broadcasted_iota(jnp.int32, (L_pad, M), 1)   # clip row id
    gt_mat = jnp.zeros((L_pad, M), jnp.int32)
    for a in range(L):                                       # tiny: O(L*M)
        gt_mat = jnp.where(a_idx == a, gt_ref[a], gt_mat)
    one_hot = jnp.logical_and(c_idx == gt_mat, a_idx < L).astype(R.dtype)
    # (L_pad, M) @ (M, N) -> sublane-packed f32 rows in GT order.
    rows = jnp.dot(one_hot, R, preferred_element_type=jnp.float32)

    # ---- Batched pair loop: one (L_pad, N) pass per anchor a covers all b.
    b_idx = lax.broadcasted_iota(jnp.int32, (L_pad, 1), 0)
    acc = jnp.zeros((L_pad, 1), jnp.float32)
    # TODO(synk): for large L switch this static unroll to lax.fori_loop over
    # `a` (rows kept in a VMEM scratch, pl.ds slicing) to keep code size O(L);
    # and on v7x add a "parallel" leading grid axis over `a` once the kernel
    # is compute-bound rather than launch-bound.
    for a in range(L - 1):
        diff = rows[a:a + 1, :] - rows                       # (L_pad, N)
        relu = jnp.maximum(diff, jnp.float32(0.0))
        ss = jnp.sum(relu * relu, axis=1, keepdims=True)     # (L_pad, 1)
        norms = jnp.sqrt(ss)                                 # vector sqrt (EUP)
        valid = jnp.logical_and(b_idx > a, b_idx < L)        # pairs with b > a
        acc = acc + jnp.where(valid, norms, jnp.float32(0.0))

    out_ref[0, 0] = jnp.sum(acc)


def clip_pairwise_loss_all(repr_arr: jax.Array, gt: jax.Array) -> jax.Array:
    """repr_arr: (M, N) float array (any float dtype); gt: (L,) int ordering."""
    assert repr_arr.ndim == 2
    assert gt.ndim == 1
    gt = gt.astype(jnp.int32)
    kernel = functools.partial(
        _clip_pairwise_loss_all_kernel, num_gt=int(gt.shape[0])
    )
    out = pl.pallas_call(
        kernel,
        out_shape=jax.ShapeDtypeStruct((1, 1), jnp.float32),
        in_specs=[
            pl.BlockSpec(memory_space=pltpu.SMEM),   # GT ordering (scalars)
            pl.BlockSpec(memory_space=pltpu.VMEM),   # repr, one whole block
        ],
        out_specs=pl.BlockSpec(memory_space=pltpu.SMEM),
        # NOTE: single whole-array VMEM block is right while launch-bound.
        # For large M*N (>= ~16 MiB scoped VMEM on v5e, ~32 MiB on v6e/v7x,
        # 64 MiB physical on v7x) raise vmem_limit_bytes via
        # pltpu.CompilerParams and/or add a 1-D "arbitrary" grid over N with
        # per-pair sum-of-squares accumulators and the sqrt on the last tile.
    )(gt, repr_arr)
    return out[0, 0]


def _reference(repr_arr, gt):
    # Pure-JAX mirror of the PyTorch double loop.
    R = repr_arr.astype(jnp.float32)
    total = jnp.float32(0.0)
    L = gt.shape[0]
    for a in range(L):
        for b in range(a + 1, L):
            diff = R[gt[a]] - R[gt[b]]
            relu = jnp.maximum(diff, jnp.float32(0.0))
            total = total + jnp.sqrt(jnp.sum(relu * relu))
    return total


if __name__ == "__main__":
    key = jax.random.PRNGKey(0)

    M, N = 6, 256                                    # M clips, feature dim N
    repr_f32 = jax.random.normal(key, (M, N), dtype=jnp.float32)

    # Case 1: GT references a subset of the clips (L < M).
    gt_sub = jnp.array([2, 0, 5, 3], dtype=jnp.int32)
    loss = clip_pairwise_loss_all(repr_f32, gt_sub)
    jax.block_until_ready(loss)
    ref = _reference(repr_f32, gt_sub)
    assert jnp.allclose(loss, ref, rtol=1e-4, atol=1e-4), (loss, ref)

    # Case 2: full permutation ordering over all M clips.
    gt_full = jnp.array([4, 1, 0, 3, 5, 2], dtype=jnp.int32)
    loss_full = clip_pairwise_loss_all(repr_f32, gt_full)
    jax.block_until_ready(loss_full)
    ref_full = _reference(repr_f32, gt_full)
    assert jnp.allclose(loss_full, ref_full, rtol=1e-4, atol=1e-4), (loss_full, ref_full)

    # Case 3: native bf16 repr kept in HBM/VMEM (half the DMA bytes); the
    # one-hot MXU gather upcasts to f32 exactly (1.0 * x products).
    repr_bf16 = repr_f32.astype(jnp.bfloat16)
    loss_bf16 = clip_pairwise_loss_all(repr_bf16, gt_full)
    jax.block_until_ready(loss_bf16)
    ref_bf16 = _reference(repr_bf16, gt_full)
    assert jnp.allclose(loss_bf16, ref_bf16, rtol=1e-3, atol=1e-3), (loss_bf16, ref_bf16)

    # Case 4: identity ordering.
    gt_id = jnp.arange(M, dtype=jnp.int32)
    loss_id = clip_pairwise_loss_all(repr_f32, gt_id)
    jax.block_until_ready(loss_id)
    assert jnp.allclose(loss_id, _reference(repr_f32, gt_id), rtol=1e-4, atol=1e-4)

    print("KERNEL_OK")
</pallas_src>

<mosaic_0001>
module attributes {stable_mosaic.version = 11 : i64} {
  func.func @_clip_pairwise_loss_all_kernel(%arg0: memref<4xi32, #tpu.memory_space<smem>>, %arg1: memref<6x256xf32, #tpu.memory_space<vmem>>, %arg2: memref<1x1xf32, #tpu.memory_space<smem>>) attributes {dimension_semantics = [], scalar_prefetch = 0 : i64, scratch_operands = 0 : i64, tpu.core_type = #tpu.core_type<tc>} {
    %c0 = arith.constant 0 : index
    %c0_0 = arith.constant 0 : index
    %0 = vector.load %arg1[%c0, %c0_0] : memref<6x256xf32, #tpu.memory_space<vmem>>, vector<6x256xf32>
    %1 = tpu.iota {dimensions = array<i32: 0>} : vector<8x6xi32>
    %2 = tpu.iota {dimensions = array<i32: 1>} : vector<8x6xi32>
    %c0_i32 = arith.constant 0 : i32
    %3 = vector.broadcast %c0_i32 : i32 to vector<8x6xi32>
    %c0_i32_1 = arith.constant 0 : i32
    %4 = vector.broadcast %c0_i32_1 : i32 to vector<8x6xi32>
    %5 = arith.cmpi eq, %1, %4 : vector<8x6xi32>
    %c0_2 = arith.constant 0 : index
    %6 = memref.load %arg0[%c0_2] : memref<4xi32, #tpu.memory_space<smem>>
    %7 = vector.broadcast %6 : i32 to vector<8x6xi32>
    %8 = arith.select %5, %7, %3 : vector<8x6xi1>, vector<8x6xi32>
    %c1_i32 = arith.constant 1 : i32
    %9 = vector.broadcast %c1_i32 : i32 to vector<8x6xi32>
    %10 = arith.cmpi eq, %1, %9 : vector<8x6xi32>
    %c1 = arith.constant 1 : index
    %11 = memref.load %arg0[%c1] : memref<4xi32, #tpu.memory_space<smem>>
    %12 = vector.broadcast %11 : i32 to vector<8x6xi32>
    %13 = arith.select %10, %12, %8 : vector<8x6xi1>, vector<8x6xi32>
    %c2_i32 = arith.constant 2 : i32
    %14 = vector.broadcast %c2_i32 : i32 to vector<8x6xi32>
    %15 = arith.cmpi eq, %1, %14 : vector<8x6xi32>
    %c2 = arith.constant 2 : index
    %16 = memref.load %arg0[%c2] : memref<4xi32, #tpu.memory_space<smem>>
    %17 = vector.broadcast %16 : i32 to vector<8x6xi32>
    %18 = arith.select %15, %17, %13 : vector<8x6xi1>, vector<8x6xi32>
    %c3_i32 = arith.constant 3 : i32
    %19 = vector.broadcast %c3_i32 : i32 to vector<8x6xi32>
    %20 = arith.cmpi eq, %1, %19 : vector<8x6xi32>
    %c3 = arith.constant 3 : index
    %21 = memref.load %arg0[%c3] : memref<4xi32, #tpu.memory_space<smem>>
    %22 = vector.broadcast %21 : i32 to vector<8x6xi32>
    %23 = arith.select %20, %22, %18 : vector<8x6xi1>, vector<8x6xi32>
    %24 = arith.cmpi eq, %2, %23 : vector<8x6xi32>
    %c4_i32 = arith.constant 4 : i32
    %25 = vector.broadcast %c4_i32 : i32 to vector<8x6xi32>
    %26 = arith.cmpi slt, %1, %25 : vector<8x6xi32>
    %27 = arith.andi %24, %26 : vector<8x6xi1>
    %28 = arith.extui %27 : vector<8x6xi1> to vector<8x6xi32>
    %29 = arith.sitofp %28 : vector<8x6xi32> to vector<8x6xf32>
    %cst = arith.constant dense<0.000000e+00> : vector<8x256xf32>
    %30 = tpu.matmul %29, %0, %cst {dimension_numbers = #tpu.dot_dimension_numbers<[1], [0], [0], [1], [0, 0, 1, 1], [], []>} : vector<8x6xf32>, vector<6x256xf32>, vector<8x256xf32> -> vector<8x256xf32>
    %31 = tpu.iota {dimensions = array<i32: 0>} : vector<8x1xi32>
    %cst_3 = arith.constant 0.000000e+00 : f32
    %32 = vector.broadcast %cst_3 : f32 to vector<8x1xf32>
    %33 = vector.extract_strided_slice %30 {offsets = [0, 0], sizes = [1, 256], strides = [1, 1]} : vector<8x256xf32> to vector<1x256xf32>
    %34 = vector.broadcast %33 : vector<1x256xf32> to vector<8x256xf32>
    %35 = arith.subf %34, %30 : vector<8x256xf32>
    %cst_4 = arith.constant 0.000000e+00 : f32
    %36 = vector.broadcast %cst_4 : f32 to vector<8x256xf32>
    %37 = arith.maximumf %35, %36 : vector<8x256xf32>
    %38 = arith.mulf %37, %37 : vector<8x256xf32>
    %cst_5 = arith.constant dense<0.000000e+00> : vector<8xf32>
    %39 = vector.multi_reduction <add>, %38, %cst_5 [1] : vector<8x256xf32> to vector<8xf32>
    %40 = vector.shape_cast %39 : vector<8xf32> to vector<8x1xf32>
    %41 = math.sqrt %40 : vector<8x1xf32>
    %c0_i32_6 = arith.constant 0 : i32
    %42 = vector.broadcast %c0_i32_6 : i32 to vector<8x1xi32>
    %43 = arith.cmpi sgt, %31, %42 : vector<8x1xi32>
    %c4_i32_7 = arith.constant 4 : i32
    %44 = vector.broadcast %c4_i32_7 : i32 to vector<8x1xi32>
    %45 = arith.cmpi slt, %31, %44 : vector<8x1xi32>
    %46 = arith.andi %43, %45 : vector<8x1xi1>
    %cst_8 = arith.constant 0.000000e+00 : f32
    %47 = vector.broadcast %cst_8 : f32 to vector<8x1xf32>
    %48 = arith.select %46, %41, %47 : vector<8x1xi1>, vector<8x1xf32>
    %49 = arith.addf %32, %48 : vector<8x1xf32>
    %50 = vector.extract_strided_slice %30 {offsets = [1, 0], sizes = [1, 256], strides = [1, 1]} : vector<8x256xf32> to vector<1x256xf32>
    %51 = vector.broadcast %50 : vector<1x256xf32> to vector<8x256xf32>
    %52 = arith.subf %51, %30 : vector<8x256xf32>
    %cst_9 = arith.constant 0.000000e+00 : f32
    %53 = vector.broadcast %cst_9 : f32 to vector<8x256xf32>
    %54 = arith.maximumf %52, %53 : vector<8x256xf32>
    %55 = arith.mulf %54, %54 : vector<8x256xf32>
    %cst_10 = arith.constant dense<0.000000e+00> : vector<8xf32>
    %56 = vector.multi_reduction <add>, %55, %cst_10 [1] : vector<8x256xf32> to vector<8xf32>
    %57 = vector.shape_cast %56 : vector<8xf32> to vector<8x1xf32>
    %58 = math.sqrt %57 : vector<8x1xf32>
    %c1_i32_11 = arith.constant 1 : i32
    %59 = vector.broadcast %c1_i32_11 : i32 to vector<8x1xi32>
    %60 = arith.cmpi sgt, %31, %59 : vector<8x1xi32>
    %c4_i32_12 = arith.constant 4 : i32
    %61 = vector.broadcast %c4_i32_12 : i32 to vector<8x1xi32>
    %62 = arith.cmpi slt, %31, %61 : vector<8x1xi32>
    %63 = arith.andi %60, %62 : vector<8x1xi1>
    %cst_13 = arith.constant 0.000000e+00 : f32
    %64 = vector.broadcast %cst_13 : f32 to vector<8x1xf32>
    %65 = arith.select %63, %58, %64 : vector<8x1xi1>, vector<8x1xf32>
    %66 = arith.addf %49, %65 : vector<8x1xf32>
    %67 = vector.extract_strided_slice %30 {offsets = [2, 0], sizes = [1, 256], strides = [1, 1]} : vector<8x256xf32> to vector<1x256xf32>
    %68 = vector.broadcast %67 : vector<1x256xf32> to vector<8x256xf32>
    %69 = arith.subf %68, %30 : vector<8x256xf32>
    %cst_14 = arith.constant 0.000000e+00 : f32
    %70 = vector.broadcast %cst_14 : f32 to vector<8x256xf32>
    %71 = arith.maximumf %69, %70 : vector<8x256xf32>
    %72 = arith.mulf %71, %71 : vector<8x256xf32>
    %cst_15 = arith.constant dense<0.000000e+00> : vector<8xf32>
    %73 = vector.multi_reduction <add>, %72, %cst_15 [1] : vector<8x256xf32> to vector<8xf32>
    %74 = vector.shape_cast %73 : vector<8xf32> to vector<8x1xf32>
    %75 = math.sqrt %74 : vector<8x1xf32>
    %c2_i32_16 = arith.constant 2 : i32
    %76 = vector.broadcast %c2_i32_16 : i32 to vector<8x1xi32>
    %77 = arith.cmpi sgt, %31, %76 : vector<8x1xi32>
    %c4_i32_17 = arith.constant 4 : i32
    %78 = vector.broadcast %c4_i32_17 : i32 to vector<8x1xi32>
    %79 = arith.cmpi slt, %31, %78 : vector<8x1xi32>
    %80 = arith.andi %77, %79 : vector<8x1xi1>
    %cst_18 = arith.constant 0.000000e+00 : f32
    %81 = vector.broadcast %cst_18 : f32 to vector<8x1xf32>
    %82 = arith.select %80, %75, %81 : vector<8x1xi1>, vector<8x1xf32>
    %83 = arith.addf %66, %82 : vector<8x1xf32>
    %84 = vector.shape_cast %83 : vector<8x1xf32> to vector<1x8x1xf32>
    %cst_19 = arith.constant dense<0.000000e+00> : vector<1xf32>
    %85 = vector.multi_reduction <add>, %84, %cst_19 [1, 2] : vector<1x8x1xf32> to vector<1xf32>
    %86 = vector.shape_cast %85 : vector<1xf32> to vector<1x1x1xf32>
    %87 = vector.extract %86[0, 0, 0] : f32 from vector<1x1x1xf32>
    %c0_20 = arith.constant 0 : index
    %c0_21 = arith.constant 0 : index
    %88 = memref.load %arg2[%c0_20, %c0_21] : memref<1x1xf32, #tpu.memory_space<smem>>
    memref.store %87, %arg2[%c0_20, %c0_21] : memref<1x1xf32, #tpu.memory_space<smem>>
    return
  }
}

</mosaic_0001>

<bundles_post_ra>
// kernel: tpu_custom_call.1
= control target key start
LH: loop header
LB: loop body
LE: loop exit
PB: predicated region body
PF: predicated region fallthrough
CT: control target
= control target key end

     0   :  { %7 = vsyncpa [#allocation4], 0  ;;  %s405_s0 = inlined_call_operand.hbm [shape: s32[4], index: 0, kind: input, shape index: {}]   ;;  %s406_s1 = inlined_call_operand.hbm [shape: f32[6,256], index: 1, kind: input, shape index: {}]   ;;  %s407_s2 = inlined_call_operand.hbm [shape: f32[1,1], index: 2, kind: output, shape index: {}]  }
   0x1   :  { %8 = vsyncpa [#allocation3], 0 }
   0x2   :  { %9 = vsyncpa [#allocation5], 0  ;;  %s275_s11 = scalar_lea.hbm %s405_s0, 16 }
   0x3   :  { %p276_p0 = scmp.ne.s32.totalorder %s405_s0, %s275_s11  ;;  %p279_p1 = scmp.lt.u32.totalorder %s275_s11, %s405_s0 }
   0x5   :  { %p281_p2 = pnand %p279_p1, %p276_p0 }
   0x7   :  { %284 = shalt.err (!%p281_p2)
}
   0x8   :  { %s323_s16 = smov [#allocation2]   ;;  %s324_s19 = smov [#allocation6]  }
   0x9   :  { %17 = dma.hbm_to_smem %s405_s0, 16, %s323_s16, [#allocation4]  }
   0xa   :  { %s24_s20 = sshll.u32 %s324_s19, 4  ;;  %s285_s23 = scalar_lea.hbm %s406_s1, 256  ;;  %s25_s20 = int_to_ptr.vmem [resolvable:$true] %s24_s20 }
   0xb   :  { %p286_p3 = scmp.ne.s32.totalorder %s406_s1, %s285_s23  ;;  %p289_p4 = scmp.lt.u32.totalorder %s285_s23, %s406_s1 }
   0xd   :  { %p291_p5 = pnand %p289_p4, %p286_p3 }
   0xf   :  { %294 = shalt.err (!%p291_p5)
}
  0x10   :  { %s295_s28 = scalar_lea.vmem %s25_s20, 256  ;;  %p300_p7 = scmp.lt.s32.totalorder %s25_s20, %s25_s20 }
  0x11   :  { %p296_p6 = scmp.ne.s32.totalorder %s25_s20, %s295_s28  ;;  %p301_p8 = scmp.lt.s32.totalorder %s295_s28, %s295_s28 }
  0x13   :  { %p302_p9 = por %p301_p8, %p300_p7 }
  0x15   :  { %p303_p10 = pnand %p302_p9, %p296_p6 }
  0x17   :  { %306 = shalt.err (!%p303_p10)
}
  0x18   :  { %27 = dma.hbm_to_vmem [thread:$0]  %s406_s1, 256, %s25_s20, [#allocation3]  }
  0x19   :  { %317 = dma.done.wait [#allocation4], 16  }
  0x1a   :  { %318 = vsyncadd [#allocation4], 4294967280 }
  0x1b   :  { %319 = dma.done.wait [#allocation3], 256  }
  0x1c   :  { %320 = vsyncadd [#allocation3], 4294967040 }
  0x1d   :  { %34 = sfence }
  0x1e   :  { %v36_v0 = vld [vmem:[#allocation6 + $0x8] sm:$0x3f]  ;;  %vm66_vm0 = vcmask 1045504   ;;  %v35_v1 = vld [vmem:[#allocation6] sm:$0x3f]  ;;  %v37_v2 = vlaneseq  ;;  %s42_s30 = sld [smem:[#allocation2]] }
  0x1f   :  { %260 = vmatprep.subr.msk.mxu0 %vm66_vm0, %v36_v0  ;;  %s256_s3 = sld [smem:[#allocation2 + $0x1]]  ;;  %v325_v3 = vmov 0.0   ;;  %s257_s4 = sld [smem:[#allocation2 + $0x2]]  ;;  %vm62_vm7 = vcmask 48128  }
  0x20   :  { %137 = vmatprep.mubr.f32.mxu0 %v325_v3  ;;  %261 = vmatpush1.msk.msra.mxu0 %vm66_vm0, %v35_v1  ;;  %v366_v4 = vshrl.u32 %v37_v2, 7  ;;  %s258_s5 = sld [smem:[#allocation2 + $0x3]]  ;;  %v40_v5 = vand.u32 127, %v37_v2  ;;  %s307_s8 = scalar_lea.hbm %s407_s2, 16 }
  0x21   :  { %p308_p11 = scmp.ne.s32.totalorder %s407_s2, %s307_s8  ;;  %p311_p12 = scmp.lt.u32.totalorder %s307_s8, %s407_s2 }
  0x22   :  { %vm41_vm1 = vcmp.eq.s32.totalorder %v366_v4, 0  ;;  %vm45_vm2 = vcmp.eq.s32.totalorder %v366_v4, 1  ;;  %vm49_vm3 = vcmp.eq.s32.totalorder %v366_v4, 2  ;;  %vm53_vm4 = vcmp.eq.s32.totalorder %v366_v4, 3 }
  0x23   :  { %vm58_vm5 = vcmp.lt.s32.totalorder %v366_v4, 4  ;;  %v202_v15 = vsub.s32 2, %v366_v4  ;;  %v146_v16 = vsub.s32 0, %v366_v4  ;;  %v174_v17 = vsub.s32 1, %v366_v4  ;;  %p313_p13 = pnand %p311_p12, %p308_p11 }
  0x24   :  { %v43_v6 = vstv %s42_s30  ;;  %vm168_vm9 = vcmp.gt.s32.totalorder %v366_v4, 0  ;;  %vm196_vm11 = vcmp.gt.s32.totalorder %v366_v4, 1  ;;  %vm224_vm15 = vcmp.gt.s32.totalorder %v366_v4, 2 }
  0x25   :  { %v47_v7 = vstv %s256_s3  ;;  %v44_v8 = vsel %vm41_vm1, %v43_v6, 0  ;;  %v51_v9 = vstv %s257_s4  ;;  %vm382_vm14 = vmand %vm168_vm9, %vm58_vm5 }
  0x26   :  { %v55_v10 = vstv %s258_s5  ;;  %v48_v11 = vsel %vm45_vm2, %v47_v7, %v44_v8  ;;  %vm197_vm1 = vmand %vm196_vm11, %vm58_vm5 }
  0x27   :  { %v52_v12 = vsel %vm49_vm3, %v51_v9, %v48_v11 }
  0x28   :  { %v56_v13 = vsel %vm53_vm4, %v55_v10, %v52_v12  ;;  %vm225_vm4 = vmand %vm224_vm15, %vm58_vm5 }
  0x29   :  { %vm57_vm6 = vcmp.eq.s32.totalorder %v40_v5, %v56_v13 }
  0x2a   :  { %vm59_vm8 = vmand %vm57_vm6, %vm58_vm5  ;;  %vm228_vm6 = vcmask 7168  }
  0x2b   :  { %v259_v14 = vsel %vm59_vm8, 1.0, %v325_v3 }
  0x2c   :  { %262 = vmatmul.mubr.msk.f32.vlgmr.msra.gmra.mrb[0].mxu0 %vm62_vm7, %v259_v14 }
  0xff   :  { %v139_v18 = vpop.f32.mrb[0].mxu0 }
 0x100   :  { %v141_v19 = vpop.f32.mrb[1].mxu0  ;;  %v203_v20 = vrot.slane %v139_v18, %v202_v15  ;;  %v147_v21 = vrot.slane %v139_v18, %v146_v16  ;;  %v175_v22 = vrot.slane %v139_v18, %v174_v17 }
 0x101   :  { %v207_v23 = vrot.slane %v141_v19, %v202_v15  ;;  %v151_v24 = vrot.slane %v141_v19, %v146_v16  ;;  %v179_v25 = vrot.slane %v141_v19, %v174_v17 }
 0x102   :  { %v208_v26 = vsub.f32 %v203_v20, %v139_v18  ;;  %v152_v27 = vsub.f32 %v147_v21, %v139_v18  ;;  %v180_v28 = vsub.f32 %v175_v22, %v139_v18 }
 0x103   :  { %v209_v29 = vsub.f32 %v207_v23, %v141_v19  ;;  %v153_v30 = vsub.f32 %v151_v24, %v141_v19  ;;  %v181_v31 = vsub.f32 %v179_v25, %v141_v19 }
 0x104   :  { %v210_v32 = vmax.f32 %v208_v26, 0.0  ;;  %v154_v33 = vmax.f32 %v152_v27, 0.0  ;;  %v182_v34 = vmax.f32 %v180_v28, 0.0 }
 0x105   :  { %v211_v35 = vmax.f32 %v209_v29, 0.0  ;;  %v155_v36 = vmax.f32 %v153_v30, 0.0  ;;  %v183_v37 = vmax.f32 %v181_v31, 0.0 }
 0x106   :  { %v212_v38 = vmul.f32 %v210_v32, %v210_v32  ;;  %v156_v39 = vmul.f32 %v154_v33, %v154_v33  ;;  %v184_v40 = vmul.f32 %v182_v34, %v182_v34 }
 0x107   :  { %v213_v41 = vmul.f32 %v211_v35, %v211_v35  ;;  %v157_v42 = vmul.f32 %v155_v36, %v155_v36  ;;  %v185_v43 = vmul.f32 %v183_v37, %v183_v37 }
 0x109   :  { %v214_v44 = vadd.f32 %v213_v41, %v212_v38  ;;  %v158_v45 = vadd.f32 %v157_v42, %v156_v39  ;;  %v186_v46 = vadd.f32 %v185_v43, %v184_v40 }
 0x10b   :  { %215 = vadd.xlane.f32.xlu1 %v214_v44  ;;  %159 = vadd.xlane.f32.xlu0 %v158_v45 }
 0x10f   :  { %187 = vadd.xlane.f32.xlu0 %v186_v46 }
 0x198   :  { %v216_v47 = vpop.xlane.xlu1 %215  ;;  %v160_v48 = vpop.xlane.xlu0 %159 }
 0x199   :  { %269 = vrsqrt.f32 %v216_v47  ;;  %vm163_vm10 = vcmp.eq.f32.partialorder %v160_v48, inf  ;;  %v166_v56 = vand.u32 2147483648, %v160_v48  ;;  %vm219_vm12 = vcmp.eq.f32.partialorder %v216_v47, inf }
 0x19a   :  { %271 = vrsqrt.f32 %v160_v48  ;;  %vm165_vm13 = vcmp.eq.f32.partialorder %v160_v48, 0.0  ;;  %v222_v62 = vand.u32 2147483648, %v216_v47  ;;  %vm221_vm3 = vcmp.eq.f32.partialorder %v216_v47, 0.0 }
 0x19c   :  { %v188_v49 = vpop.xlane.xlu0 %187 }
 0x19d   :  { %273 = vrsqrt.f32 %v188_v49  ;;  %vm191_vm0 = vcmp.eq.f32.partialorder %v188_v49, inf  ;;  %v194_v60 = vand.u32 2147483648, %v188_v49  ;;  %vm193_vm2 = vcmp.eq.f32.partialorder %v188_v49, 0.0 }
 0x1a3   :  { %v270_v50 = vpop.eup %269 }
 0x1a4   :  { %v272_v51 = vpop.eup %271  ;;  %v218_v52 = vmul.f32 %v270_v50, %v216_v47 }
 0x1a5   :  { %v162_v53 = vmul.f32 %v272_v51, %v160_v48 }
 0x1a6   :  { %v220_v59 = vsel %vm219_vm12, %v216_v47, %v218_v52 }
 0x1a7   :  { %v274_v54 = vpop.eup %273  ;;  %v164_v55 = vsel %vm163_vm10, %v160_v48, %v162_v53  ;;  %v223_v1 = vsel %vm221_vm3, %v222_v62, %v220_v59 }
 0x1a8   :  { %v190_v57 = vmul.f32 %v274_v54, %v188_v49  ;;  %v167_v61 = vsel %vm165_vm13, %v166_v56, %v164_v55  ;;  %v226_v6 = vsel %vm225_vm4, %v223_v1, 0.0 }
 0x1a9   :  { %v170_v2 = vsel %vm382_vm14, %v167_v61, 0.0 }
 0x1aa   :  { %v192_v63 = vsel %vm191_vm0, %v188_v49, %v190_v57 }
 0x1ab   :  { %v195_v0 = vsel %vm193_vm2, %v194_v60, %v192_v63 }
 0x1ac   :  { %v198_v3 = vsel %vm197_vm1, %v195_v0, 0.0 }
 0x1ad   :  { %v199_v5 = vadd.f32 %v198_v3, %v170_v2 }
 0x1af   :  { %v227_v7 = vadd.f32 %v226_v6, %v199_v5 }
 0x1b1   :  { %v229_v8 = vsel %vm228_vm6, %v227_v7, 0.0 }
 0x1b2   :  { %230 = vadd.xlane.f32.xlu1 %v229_v8 }
 0x23f   :  { %v231_v9 = vpop.xlane.xlu1 %230 }
 0x240   :  { %v232_v10 = vrot.slane %v231_v9, 4 }
 0x242   :  { %v233_v11 = vadd.f32 %v232_v10, %v231_v9 }
 0x244   :  { %v234_v12 = vrot.slane %v233_v11, 2 }
 0x246   :  { %v235_v13 = vadd.f32 %v234_v12, %v233_v11 }
 0x248   :  { %v236_v14 = vrot.slane %v235_v13, 1 }
 0x24a   :  { %v237_v15 = vadd.f32 %v236_v14, %v235_v13 }
 0x24c   :  { %263 = vpush %v237_v15 }
 0x27d   :  { %s264_s1 = spop %263 }
 0x27e   :  { %240 = sst [smem:[#allocation7]] %s264_s1 }
 0x27f   :  { %316 = shalt.err (!%p313_p13)
}
 0x280   :  { %s326_s13 = smov [#allocation7]  }
 0x281   :  { %248 = dma.smem_to_hbm %s326_s13, 16, %s407_s2, [#allocation5]  }
 0x282   :  { %321 = dma.done.wait [#allocation5], 16  }
 0x283   :  { %322 = vsyncadd [#allocation5], 4294967280 }
 0x284   :  { %252 = sfence }
 0x285   :  { %253 = vsyncpa [#allocation3], 1 }
 0x286   :  { %254 = vsyncpa [#allocation4], 1 }
 0x287   :  { %255 = vsyncpa [#allocation5], 1 }

</bundles_post_ra>
